<compile_context>
chip_gen: v7x
topology: tpu7x:2x2x1
jax: 0.10.0
libtpu: 0.0.40
codegen_flags: <defaults>
</compile_context>

<pallas_src>
import functools

import numpy as np
import jax
import jax.numpy as jnp
from jax.experimental import pallas as pl
from jax.experimental.pallas import tpu as pltpu


# ----------------------------- static weights ------------------------------

def _gaussian_kernel_1d(ksize: int, sigma: float) -> np.ndarray:
    half = (ksize - 1) * 0.5
    x = np.linspace(-half, half, ksize)
    pdf = np.exp(-0.5 * (x / sigma) ** 2)
    return pdf / pdf.sum()


def _reflect_index(i: int, n: int) -> int:
    # torch.nn.functional.pad(mode="reflect") indexing (edge not repeated).
    if i < 0:
        return -i
    if i >= n:
        return 2 * (n - 1) - i
    return i


def _banded_blur_matrix(n: int, ksize: int, sigma: float) -> np.ndarray:
    """M such that M @ v is the 1-D Gaussian blur of v with reflect padding."""
    k1 = _gaussian_kernel_1d(ksize, sigma)
    pad = ksize // 2
    M = np.zeros((n, n), np.float64)
    for out_i in range(n):
        for t in range(ksize):
            M[out_i, _reflect_index(out_i + t - pad, n)] += k1[t]
    return M.astype(np.float32)


# ----------------------------- VMEM accounting ------------------------------

def _padded_vmem_bytes(rows: int, cols: int, itemsize: int = 4) -> int:
    """Bytes a (rows, cols) array occupies in VMEM with (8,128) tile padding."""
    r = -(-rows // 8) * 8
    c = -(-cols // 128) * 128
    return r * c * itemsize


def _choose_plane_batch(nc: int, h: int, w: int, io_itemsize: int,
                        vmem_budget_bytes: int, max_planes: int = 256) -> int:
    """Pick B (planes per grid block), B | nc.

    Counts the real VMEM footprint (double-buffered in/out blocks, both weight
    matrices, f32 intermediates, per-plane Bv broadcast — all tile-padded) and
    prefers the largest B that still leaves >= 2 grid steps so v7x's two
    TensorCores both get work.  max_planes bounds the batched-matmul size.
    """
    def footprint(b):
        blk_f32 = b * _padded_vmem_bytes(h, w, 4)          # one f32 plane-block
        blk_io = b * _padded_vmem_bytes(h, w, io_itemsize)  # one in/out plane-block
        io = 2 * 2 * blk_io                                 # double-buffered in + out
        weights = 2 * (_padded_vmem_bytes(h, h) + _padded_vmem_bytes(w, w))
        temps = 3 * blk_f32 + b * _padded_vmem_bytes(h, h)  # x_f32, y, z + Bv broadcast
        return io + weights + temps

    fits = [b for b in range(1, min(nc, max_planes) + 1)
            if nc % b == 0 and footprint(b) <= vmem_budget_bytes]
    if not fits:
        return 1
    multi = [b for b in fits if nc // b >= 2]   # keep >=2 grid steps (v7x megacore)
    return max(multi) if multi else max(fits)


# --------------------------------- kernel ----------------------------------

def _blur_kernel(x_ref, bv_ref, bh_ref, o_ref, *, precision):
    # x_ref : (B, H, W)  B whole image planes (native NCHW layout, no relayout)
    # bv_ref: (H, H)     vertical Gaussian, reflect boundary folded in
    # bh_ref: (W, W)     horizontal Gaussian (transposed), reflect folded in
    B, H, W = x_ref.shape
    x = x_ref[...].astype(jnp.float32)                      # single upcast

    # Vertical pass: per-plane Bv @ plane, as one batched MXU matmul.
    bv = jnp.broadcast_to(bv_ref[...], (B, H, H))           # O(B*H^2) f32, accounted
    y = jnp.einsum('bij,bjw->biw', bv, x,
                   precision=precision,
                   preferred_element_type=jnp.float32)      # (B, H, W)

    # Horizontal pass: all B*H rows against the (W, W) weight in ONE matmul
    # (replaces the block-diagonal kron(I_B, Bh) of the previous version).
    if H % 8 == 0:
        # (B,H,W)->(B*H,W) is layout-preserving when H is a sublane multiple.
        z = jnp.dot(y.reshape(B * H, W), bh_ref[...],
                    precision=precision,
                    preferred_element_type=jnp.float32).reshape(B, H, W)
    else:
        bh = jnp.broadcast_to(bh_ref[...], (B, W, W))
        z = jnp.einsum('bhl,blj->bhj', y, bh,
                       precision=precision,
                       preferred_element_type=jnp.float32)

    o_ref[...] = z.astype(o_ref.dtype)


def make_gaussian_blur(H: int, W: int, ksize: int, sigma: float, *,
                       precision=jax.lax.Precision.HIGHEST,
                       vmem_limit_bytes: int = 32 * 1024 * 1024):
    """Returns fn(x: [N, C, H, W]) -> [N, C, H, W] Gaussian-blurred."""
    assert ksize % 2 == 1, "kernel_size must be odd (torchvision requirement)"
    pad = ksize // 2
    assert pad < H and pad < W, "reflect padding requires kernel_size//2 < spatial dims"

    bv_np = _banded_blur_matrix(H, ksize, sigma)        # rows: out = Bv @ plane
    bh_np = _banded_blur_matrix(W, ksize, sigma).T      # cols: out = plane @ Bh

    kernel = functools.partial(_blur_kernel, precision=precision)

    def blur(x):
        N, C, h, w = x.shape
        assert (h, w) == (H, W)
        NC = N * C

        # Free reshape: planes stay contiguous, no HBM transpose on either side.
        xs = x.reshape(NC, H, W)

        B = _choose_plane_batch(NC, H, W, x.dtype.itemsize,
                                vmem_budget_bytes=vmem_limit_bytes // 2)
        num_blocks = NC // B

        bv = jnp.asarray(bv_np)
        bh = jnp.asarray(bh_np)

        out = pl.pallas_call(
            kernel,
            out_shape=jax.ShapeDtypeStruct((NC, H, W), x.dtype),
            grid_spec=pltpu.PrefetchScalarGridSpec(
                num_scalar_prefetch=0,
                grid=(num_blocks,),
                in_specs=[
                    pl.BlockSpec((B, H, W), lambda i: (i, 0, 0)),
                    # Constant-index weight tiles (a few KiB each); double
                    # buffering them is negligible now that the kron is gone.
                    pl.BlockSpec((H, H), lambda i: (0, 0)),
                    pl.BlockSpec((W, W), lambda i: (0, 0)),
                ],
                out_specs=pl.BlockSpec((B, H, W), lambda i: (i, 0, 0)),
            ),
            compiler_params=pltpu.CompilerParams(
                dimension_semantics=("parallel",),   # shard blocks across v7x TCs
                vmem_limit_bytes=vmem_limit_bytes,   # 32 MiB: safe on v5e/v6e/v7x
            ),
        )(xs, bv, bh)

        return out.reshape(N, C, H, W)

    return blur


# ------------------------------- reference ---------------------------------

def gaussian_blur_reference(x, ksize, sigma):
    """Pure-JAX reference replicating torchvision gaussian_blur."""
    pad = ksize // 2
    k1 = _gaussian_kernel_1d(ksize, sigma)
    k2 = jnp.asarray(np.outer(k1, k1).astype(np.float32))
    xp = jnp.pad(x, ((0, 0), (0, 0), (pad, pad), (pad, pad)), mode="reflect")
    N, C, H, W = x.shape
    out = jnp.zeros_like(x)
    for ky in range(ksize):
        for kx in range(ksize):
            out = out + k2[ky, kx] * xp[:, :, ky:ky + H, kx:kx + W]
    return out


if __name__ == "__main__":
    # configs['augmentations'] = {'kernel_size': 5, 'sigma': 1.5}
    KSIZE = 5
    SIGMA = 1.5
    N, C, H, W = 2, 4, 16, 16

    key = jax.random.PRNGKey(0)
    x = jax.random.uniform(key, (N, C, H, W), dtype=jnp.float32)

    blur = jax.jit(make_gaussian_blur(H, W, KSIZE, SIGMA))
    y = jax.block_until_ready(blur(x))

    y_ref = gaussian_blur_reference(x, KSIZE, SIGMA)
    np.testing.assert_allclose(np.asarray(y), np.asarray(y_ref),
                               rtol=1e-5, atol=1e-5)

    print("KERNEL_OK")
</pallas_src>

<mosaic_0001>
module attributes {stable_mosaic.version = 11 : i64} {
  func.func @_blur_kernel(%arg0: i32, %arg1: memref<4x16x16xf32, #tpu.memory_space<vmem>>, %arg2: memref<16x16xf32, #tpu.memory_space<vmem>>, %arg3: memref<16x16xf32, #tpu.memory_space<vmem>>, %arg4: memref<4x16x16xf32, #tpu.memory_space<vmem>>) attributes {dimension_semantics = [#tpu.dimension_semantics<parallel>], iteration_bounds = array<i64: 2>, scalar_prefetch = 0 : i64, scratch_operands = 0 : i64, tpu.core_type = #tpu.core_type<tc>, window_params = [{transform_indices = @transform_0, window_bounds = array<i64: 4, 16, 16>}, {pipeline_mode = #tpu.pipeline_mode<synchronous>, transform_indices = @transform_1, window_bounds = array<i64: 16, 16>}, {pipeline_mode = #tpu.pipeline_mode<synchronous>, transform_indices = @transform_2, window_bounds = array<i64: 16, 16>}, {transform_indices = @transform_3, window_bounds = array<i64: 4, 16, 16>}]} {
    %c0 = arith.constant 0 : index
    %c0_0 = arith.constant 0 : index
    %c0_1 = arith.constant 0 : index
    %0 = vector.load %arg1[%c0, %c0_0, %c0_1] : memref<4x16x16xf32, #tpu.memory_space<vmem>>, vector<4x16x16xf32>
    %c0_2 = arith.constant 0 : index
    %c0_3 = arith.constant 0 : index
    %1 = vector.load %arg2[%c0_2, %c0_3] : memref<16x16xf32, #tpu.memory_space<vmem>>, vector<16x16xf32>
    %2 = vector.shape_cast %1 : vector<16x16xf32> to vector<1x16x16xf32>
    %3 = vector.broadcast %2 : vector<1x16x16xf32> to vector<4x16x16xf32>
    "tpu.trace_start"() <{level = 10 : i32, message = "bij,bjw->biw"}> : () -> ()
    %cst = arith.constant dense<0.000000e+00> : vector<4x16x16xf32>
    %4 = tpu.matmul %3, %0, %cst {dimension_numbers = #tpu.dot_dimension_numbers<[2], [1], [1], [2], [0, 0, 0, 1, 1, 2], [0], [0]>, precision = #tpu.contract_precision<fp32>} : vector<4x16x16xf32>, vector<4x16x16xf32>, vector<4x16x16xf32> -> vector<4x16x16xf32>
    "tpu.trace_stop"() : () -> ()
    %5 = vector.shape_cast %4 : vector<4x16x16xf32> to vector<64x16xf32>
    %c0_4 = arith.constant 0 : index
    %c0_5 = arith.constant 0 : index
    %6 = vector.load %arg3[%c0_4, %c0_5] : memref<16x16xf32, #tpu.memory_space<vmem>>, vector<16x16xf32>
    %cst_6 = arith.constant dense<0.000000e+00> : vector<64x16xf32>
    %7 = tpu.matmul %5, %6, %cst_6 {dimension_numbers = #tpu.dot_dimension_numbers<[1], [0], [0], [1], [0, 0, 1, 1], [], []>, precision = #tpu.contract_precision<fp32>} : vector<64x16xf32>, vector<16x16xf32>, vector<64x16xf32> -> vector<64x16xf32>
    %8 = vector.shape_cast %7 : vector<64x16xf32> to vector<4x16x16xf32>
    %c0_7 = arith.constant 0 : index
    %c0_8 = arith.constant 0 : index
    %c0_9 = arith.constant 0 : index
    %9 = vector.load %arg4[%c0_7, %c0_8, %c0_9] : memref<4x16x16xf32, #tpu.memory_space<vmem>>, vector<4x16x16xf32>
    tpu.vector_store %arg4[%c0_7, %c0_8, %c0_9], %8 {strides = array<i32>} : memref<4x16x16xf32, #tpu.memory_space<vmem>>, vector<4x16x16xf32>,
    return
  }
  func.func @transform_0(%arg0: i32) -> (i32, i32, i32) {
    %c0_i32 = arith.constant 0 : i32
    %c0_i32_0 = arith.constant 0 : i32
    %c0_i32_1 = arith.constant 0 : i32
    return %arg0, %c0_i32, %c0_i32_0 : i32, i32, i32
  }
  func.func @transform_1(%arg0: i32) -> (i32, i32) {
    %c0_i32 = arith.constant 0 : i32
    %c0_i32_0 = arith.constant 0 : i32
    %c0_i32_1 = arith.constant 0 : i32
    return %c0_i32, %c0_i32_0 : i32, i32
  }
  func.func @transform_2(%arg0: i32) -> (i32, i32) {
    %c0_i32 = arith.constant 0 : i32
    %c0_i32_0 = arith.constant 0 : i32
    %c0_i32_1 = arith.constant 0 : i32
    return %c0_i32, %c0_i32_0 : i32, i32
  }
  func.func @transform_3(%arg0: i32) -> (i32, i32, i32) {
    %c0_i32 = arith.constant 0 : i32
    %c0_i32_0 = arith.constant 0 : i32
    %c0_i32_1 = arith.constant 0 : i32
    return %arg0, %c0_i32, %c0_i32_0 : i32, i32, i32
  }
}

</mosaic_0001>

<bundles_post_ra>
// kernel: blur.1
= control target key start
LH: loop header
LB: loop body
LE: loop exit
PB: predicated region body
PF: predicated region fallthrough
CT: control target
= control target key end

     0   :  { %8 = vsyncpa [#allocation3], 0  ;;  %s4480_s0 = inlined_call_operand.hbm [shape: f32[8,16,16], index: 0, kind: input, shape index: {}]   ;;  %s4481_s1 = inlined_call_operand.hbm [shape: f32[16,16], index: 1, kind: input, shape index: {}]   ;;  %s4482_s2 = inlined_call_operand.hbm [shape: f32[16,16], index: 2, kind: input, shape index: {}]   ;;  %s4483_s3 = inlined_call_operand.hbm [shape: f32[8,16,16], index: 3, kind: output, shape index: {}]  }
   0x1   :  { %10 = vsyncpa [#allocation3 + $0x1], 0 }
   0x2   :  { %11 = vsyncpa [#allocation6], 0 }
   0x3   :  { %12 = vsyncpa [#allocation4], 0 }
   0x4   :  { %14 = vsyncpa [#allocation4 + $0x1], 0  ;;  %s4048_s12 = smov 0   ;;  %s4050_s13 = smov 0  }
   0x5   :  { %s4052_s14 = smov 0   ;;  %s4054_s15 = smov 0  }
   0x6 LB: > { %s4069_s16 = sadd.s32 4294967295, %s4018_s15   ;;  %s3147_s17 = sadd.s32 4294967294, %s4018_s15   ;;  %s4018_s15 = sphi %s4054_s15, %s4503_s15   ;;  %s4014_s14 = sphi %s4052_s14, %s4502_s14   ;;  %s4010_s13 = sphi %s4050_s13, %s4501_s13   ;;  %s4006_s12 = sphi %s4048_s12, %s4500_s12  }
   0x7   : > { %p40_p0 = scmp.ne.s32.totalorder %s4010_s13, %s4006_s12  ;;  %p4484_p1 = scmp.eq.s32.totalorder %s4069_s16, 0 }
   0x8   : > { %p112_p3 = scmp.eq.s32.totalorder %s3147_s17, 1  ;;  %p3148_p5 = scmp.ge.s32.totalorder %s4018_s15, 1 }
   0x9   : > { %p4078_p4 = por %p4484_p1, %p40_p0  ;;  %p119_p7 = scmp.lt.s32.totalorder %s4018_s15, 3 }
   0xa   : > { %p4083_p6 = por %p112_p3, %p40_p0  ;;  %s4020_s21 = smov [#allocation5]  }
   0xb   : > { %s4487_s18 = scalar_select %p4078_p4, 1, 0 }
   0xc   : > { %s4488_s19 = scalar_select %p4083_p6, 1, 0 }
   0xd   : > { %p4088_p8 = pnand %p3148_p5, %p119_p7  ;;  %s131_s22 = sshll.u32 %s4020_s21, 4  ;;  %s4092_s22 = int_to_ptr.vmem [resolvable:$true] %s131_s22 }
   0xe   : > { %s4021_s24 = smov [#allocation7]   ;;  %s3862_s28 = scalar_lea.hbm %s4481_s1, 256 }
   0xf   : > { %p3803_p9 = pneg %p4088_p8  ;;  %s144_s25 = sshll.u32 %s4021_s24, 4  ;;  %s4103_s25 = int_to_ptr.vmem [resolvable:$true] %s144_s25 }
  0x10   : > { %p3863_p12 = scmp.ne.s32.totalorder %s4481_s1, %s3862_s28  ;;  %p3869_p5 = scmp.lt.u32.totalorder %s3862_s28, %s4481_s1 }
  0x11   : > { %p4099_p11 = pnand %p3803_p9, %p4484_p1 }
  0x13   : > { %p3864_p13 = pneg %p4099_p11 }
  0x15   : > { %p3865_p0 = pnand %p3864_p13, %p3863_p12 }
  0x17   : > { %p3866_p3 = pneg %p3865_p0 }
  0x19   : > { %p3871_p7 = pnand %p3869_p5, %p3866_p3 }
  0x1b   : > { %3874 = shalt.err (!%p3871_p7)
}
  0x1c   : > { %s3875_s6 = scalar_lea.vmem %s4092_s22, 256  ;;  %p3883_p2 = scmp.lt.s32.totalorder %s4092_s22, %s4092_s22 }
  0x1d   : > { %p3876_p9 = scmp.ne.s32.totalorder %s4092_s22, %s3875_s6  ;;  %p3884_p12 = scmp.lt.s32.totalorder %s3875_s6, %s3875_s6 }
  0x1f   : > { %p3878_p10 = pnand %p3876_p9, %p3864_p13  ;;  %p3885_p0 = por %p3884_p12, %p3883_p2 }
  0x21   : > { %p3879_p1 = pneg %p3878_p10 }
  0x23   : > { %p3886_p6 = pnand %p3885_p0, %p3879_p1 }
  0x25   : > { %3889 = shalt.err (!%p3886_p6)
}
  0x26   : > { %s4022_s7 = smov 128   ;;  %s4023_s8 = smov 8  }
  0x27   : > { %3806 = dma.hbm_to_vmem [thread:$0]  (!%p4099_p11), %s4481_s1, 256, %s4092_s22, [#allocation6], %s4022_s7, %s4022_s7, %s4023_s8  }
  0x28   : > { %s3890_s21 = scalar_lea.hbm %s4482_s2, 256 }
  0x29   : > { %p3891_p1 = scmp.ne.s32.totalorder %s4482_s2, %s3890_s21  ;;  %p3897_p10 = scmp.lt.u32.totalorder %s3890_s21, %s4482_s2 }
  0x2b   : > { %p3893_p2 = pnand %p3891_p1, %p3864_p13 }
  0x2d   : > { %p3894_p6 = pneg %p3893_p2 }
  0x2f   : > { %p3899_p3 = pnand %p3897_p10, %p3894_p6 }
  0x31   : > { %3902 = shalt.err (!%p3899_p3)
}
  0x32   : > { %s3903_s22 = scalar_lea.vmem %s4103_s25, 256  ;;  %p3911_p12 = scmp.lt.s32.totalorder %s4103_s25, %s4103_s25 }
  0x33   : > { %p3904_p5 = scmp.ne.s32.totalorder %s4103_s25, %s3903_s22  ;;  %p3912_p0 = scmp.lt.s32.totalorder %s3903_s22, %s3903_s22 }
  0x35   : > { %p3906_p7 = pnand %p3904_p5, %p3864_p13  ;;  %p3913_p1 = por %p3912_p0, %p3911_p12 }
  0x37   : > { %p3907_p9 = pneg %p3906_p7 }
  0x39   : > { %p3914_p2 = pnand %p3913_p1, %p3907_p9 }
  0x3b   : > { %3917 = shalt.err (!%p3914_p2)
}
  0x3c   : > { %3809 = dma.hbm_to_vmem [thread:$0]  (!%p4099_p11), %s4482_s2, 256, %s4103_s25, [#allocation6], %s4022_s7, %s4022_s7, %s4023_s8  }
  0x3d   : > { %s4164_s23 = sadd.s32 1, %s4018_s15   ;;  %s27_s4 = sadd.s32 1, %s4014_s14 }
  0x3e   : > { %s24_s5 = ssub.s32 %s4018_s15, %s4164_s23  ;;  %p34_p13 = scmp.ne.s32.totalorder %s4014_s14, %s4010_s13 }
  0x3f   : > { %p25_p6 = scmp.eq.s32.totalorder %s24_s5, 0  ;;  %p35_p10 = scmp.eq.s32.totalorder %s4018_s15, 0 }
  0x40   : > { %p4491_p3 = scmp.eq.s32.totalorder %s4069_s16, 1  ;;  %p3820_p7 = scmp.lt.s32.totalorder %s4018_s15, 2 }
  0x41   : > { %s4180_s9 = scalar_select %p25_p6, %s4014_s14, %s27_s4  }
  0x42   : > { %p4174_p5 = por %p4491_p3, %p34_p13  ;;  %p36_p9 = por %p35_p10, %p34_p13 }
  0x43   : > { %s158_s10 = sand.u32 1, %s4014_s14   ;;  %s3168_s25 = sshll.u32 %s4018_s15, 10 }
  0x44   : > { %s4492_s6 = scalar_select %p4174_p5, 1, 0 }
  0x45   : > { %s3152_s11 = sshll.u32 %s158_s10, 6  ;;  %s4187_s24 = scalar_lea.hbm %s4480_s0, %s3168_s25 }
  0x46   : > { %s162_s26 = scalar_lea.vmem [#allocation2], %s3152_s11  ;;  %p4191_p11 = pnand %p3820_p7, %p36_p9 }
  0x47   : > { %s170_s27 = sshll.u32 %s162_s26, 4  ;;  %s4195_s22 = scalar_lea.sflag [#allocation3], %s158_s10  ;;  %s4189_s27 = int_to_ptr.vmem [resolvable:$true] %s170_s27 }
  0x48   : > { %s3918_s29 = scalar_lea.hbm %s4187_s24, 1024  ;;  %p3920_p0 = pneg %p4191_p11 }
  0x49   : > { %p3919_p12 = scmp.ne.s32.totalorder %s4187_s24, %s3918_s29  ;;  %s3923_s5 = scalar_lea.hbm %s4480_s0, 2048 }
  0x4a   : > { %p3924_p13 = scmp.lt.u32.totalorder %s4187_s24, %s4480_s0  ;;  %p3925_p6 = scmp.lt.u32.totalorder %s3923_s5, %s3918_s29 }
  0x4b   : > { %p3921_p1 = pnand %p3920_p0, %p3919_p12  ;;  %p3927_p3 = scmp.lt.u32.totalorder %s3918_s29, %s4187_s24 }
  0x4c   : > { %p3926_p10 = por %p3925_p6, %p3924_p13 }
  0x4d   : > { %p3922_p2 = pneg %p3921_p1 }
  0x4e   : > { %p3928_p7 = por %p3927_p3, %p3926_p10 }
  0x50   : > { %p3929_p9 = pnand %p3928_p7, %p3922_p2 }
  0x52   : > { %3932 = shalt.err (!%p3929_p9)
}
  0x53   : > { %s3933_s10 = scalar_lea.vmem %s4189_s27, 1024  ;;  %s4024_s17 = smov [#allocation2]  }
  0x54   : > { %p3934_p12 = scmp.ne.s32.totalorder %s4189_s27, %s3933_s10  ;;  %s3938_s21 = sshll.u32 %s4024_s17, 4  ;;  %s3939_s21 = int_to_ptr.vmem [resolvable:$false] %s3938_s21 }
  0x55   : > { %s3940_s26 = scalar_lea.vmem %s3939_s21, 2048  ;;  %p3941_p4 = scmp.lt.s32.totalorder %s4189_s27, %s3939_s21 }
  0x56   : > { %p3936_p1 = pnand %p3934_p12, %p3920_p0  ;;  %p3942_p13 = scmp.lt.s32.totalorder %s3940_s26, %s3933_s10 }
  0x58   : > { %p3937_p5 = pneg %p3936_p1  ;;  %p3943_p6 = por %p3942_p13, %p3941_p4 }
  0x5a   : > { %p3944_p10 = pnand %p3943_p6, %p3937_p5 }
  0x5c   : > { %3947 = shalt.err (!%p3944_p10)
}
  0x5d   : > { %3813 = dma.hbm_to_vmem [thread:$0]  (!%p4191_p11), %s4187_s24, 1024, %s4189_s27, %s4195_s22, %s4022_s7, %s4022_s7, %s4023_s8  }
  0x5e   : > { %182 = sbr.rel (%p4088_p8) target bundleno = 695 (0x2b7), region = 32  ;;  %s4229_s29 = sand.u32 (!%p4088_p8), 1, %s4010_s13  }
  0x5f   : > { %s3157_s30 = sshll.u32 (!%p4088_p8), %s4229_s29, 6  ;;  %s185_s4 = scalar_lea.sflag (!%p4088_p8), [#allocation3], %s4229_s29 }
  0x60   : > { %s4235_s28 = scalar_lea.vmem (!%p4088_p8), [#allocation2], %s3157_s30  ;;  %p4494_p4 = scmp.ne.s32.totalorder (!%p4088_p8), %s4487_s18, 0 }
  0x65   : > { %3993 = dma.done.wait (%p4494_p4), %s185_s4, 1024  }
  0x66   : > { %3995 = vsyncadd (%p4494_p4), %s185_s4, 4294966272  ;;  %p4495_p5 = scmp.eq.s32.totalorder %s4069_s16, 0 }
  0x68   : > { %3997 = dma.done.wait (%p4495_p5), [#allocation6], 512   ;;  %p4496_p8 = pmov %p4495_p5 }
  0x69   : > { %vm231_vm0 = vcmask 130048   ;;  %v221_v0 = vld [vmem:[%s4235_s28] sm:$0xff]  ;;  %v222_v1 = vld [vmem:[%s4235_s28 + $0x8] sm:$0xff]  ;;  %v223_v2 = vld [vmem:[%s4235_s28 + $0x10] sm:$0xff]  ;;  %s218_s18 = scalar_lea.vmem [#allocation8], %s3157_s30  ;;  %s3170_s20 = sshll.u32 %s4069_s16, 10 }
  0x6a   : > { %3999 = vsyncadd (%p4496_p8), [#allocation6], 4294966784  ;;  %v239_v3 = vand.u32 4294901760, %v221_v0  ;;  %v242_v4 = vand.u32 4294901760, %v222_v1  ;;  %v224_v5 = vld [vmem:[%s4235_s28 + $0x18] sm:$0xff]  ;;  %v741_v6 = vand.u32 4294901760, %v223_v2  ;;  %s4432_s27 = scalar_lea.hbm %s4483_s3, %s3170_s20 }
  0x6b   : > { %v229_v7 = vld [vmem:[#allocation5] sm:$0xff]  ;;  %v230_v8 = vld [vmem:[#allocation5 + $0x8] sm:$0xff]  ;;  %v744_v9 = vand.u32 4294901760, %v224_v5  ;;  %v227_v48 = vld [vmem:[%s4235_s28 + $0x30] sm:$0xff]  ;;  %s3055_s7 = sshll.u32 %s218_s18, 4  ;;  %s3041_s16 = scalar_lea.sflag [#allocation4], %s4229_s29  ;;  %s4434_s7 = int_to_ptr.vmem [resolvable:$true] %s3055_s7 }
  0x6c   : > { %v233_v10 = vsel %vm231_vm0, %v229_v7, 0  ;;  %v236_v11 = vsel %vm231_vm0, %v230_v8, 0  ;;  %v4251_v12 = vpack.c.bf16 %v242_v4, %v239_v3  ;;  %v327_v15 = vsub.f32 %v221_v0, %v239_v3  ;;  %v225_v46 = vld [vmem:[%s4235_s28 + $0x20] sm:$0xff]  ;;  %v226_v47 = vld [vmem:[%s4235_s28 + $0x28] sm:$0xff]  ;;  %v228_v49 = vld [vmem:[%s4235_s28 + $0x38] sm:$0xff]  ;;  %s3948_s22 = scalar_lea.vmem %s4434_s7, 1024 }
  0x6d   : > { %v4253_v13 = vand.u32 4294901760, %v233_v10  ;;  %v4255_v14 = vand.u32 4294901760, %v236_v11  ;;  %v4257_v16 = vpack.c.bf16 %v744_v9, %v741_v6  ;;  %v334_v17 = vsub.f32 %v222_v1, %v242_v4  ;;  %p3949_p11 = scmp.ne.s32.totalorder %s4434_s7, %s3948_s22  ;;  %p4497_p0 = scmp.ne.s32.totalorder %s4492_s6, 0 }
  0x6e   : > { %v829_v18 = vsub.f32 %v223_v2, %v741_v6  ;;  %v836_v19 = vsub.f32 %v224_v5, %v744_v9  ;;  %3592 = vmatprep.subr.bf16.mxu0 %v4251_v12  ;;  %v328_v22 = vand.u32 4294901760, %v327_v15  ;;  %v1243_v50 = vand.u32 4294901760, %v225_v46  ;;  %s4025_s5 = smov [#allocation8]  }
  0x6f   : > { %v4261_v20 = vsub.f32 %v233_v10, %v4253_v13  ;;  %v4264_v21 = vsub.f32 %v236_v11, %v4255_v14  ;;  %3616 = vmatprep.subr.bf16.mxu1 %v4257_v16  ;;  %3594 = vmatpush3.bf16.msra.mxu0 %v4251_v12  ;;  %v335_v23 = vand.u32 4294901760, %v334_v17  ;;  %v3599_v42 = vpack.c.bf16 %v334_v17, %v327_v15  ;;  %p3950_p2 = pnand %p3949_p11, %p4497_p0  ;;  %s3952_s11 = sshll.u32 %s4025_s5, 4  ;;  %s3953_s11 = int_to_ptr.vmem [resolvable:$false] %s3952_s11 }
  0x70   : > { %v830_v24 = vand.u32 4294901760, %v829_v18  ;;  %v837_v25 = vand.u32 4294901760, %v836_v19  ;;  %3618 = vmatpush3.bf16.msra.mxu1 %v4257_v16  ;;  %v329_v28 = vsub.f32 %v327_v15, %v328_v22  ;;  %v3623_v43 = vpack.c.bf16 %v836_v19, %v829_v18  ;;  %s3954_s25 = scalar_lea.vmem %s3953_s11, 2048  ;;  %p3955_p7 = scmp.lt.s32.totalorder %s4434_s7, %s3953_s11 }
  0x71   : > { %v4270_v26 = vand.u32 4294901760, %v4261_v20  ;;  %v4273_v27 = vand.u32 4294901760, %v4264_v21  ;;  %v336_v29 = vsub.f32 %v334_v17, %v335_v23  ;;  %v3607_v44 = vpack.c.bf16 %v335_v23, %v328_v22  ;;  %v2247_v17 = vld [vmem:[#allocation7 + $0x8] sm:$0xff]  ;;  %p3951_p3 = pneg %p3950_p2  ;;  %p3956_p9 = scmp.lt.s32.totalorder %s3954_s25, %s3948_s22 }
  0x72   : > { %v831_v30 = vsub.f32 %v829_v18, %v830_v24  ;;  %v838_v31 = vsub.f32 %v836_v19, %v837_v25  ;;  %v330_v34 = vand.u32 4294901760, %v329_v28  ;;  %v3631_v45 = vpack.c.bf16 %v837_v25, %v830_v24 }
  0x73   : > { %v308_v32 = vsub.f32 %v4261_v20, %v4270_v26  ;;  %v318_v33 = vsub.f32 %v4264_v21, %v4273_v27  ;;  %v337_v35 = vand.u32 4294901760, %v336_v29  ;;  %v1246_v51 = vand.u32 4294901760, %v226_v47  ;;  %p3957_p12 = por %p3956_p9, %p3955_p7 }
  0x74   : > { %v832_v36 = vand.u32 4294901760, %v831_v30  ;;  %v839_v37 = vand.u32 4294901760, %v838_v31  ;;  %v1745_v52 = vand.u32 4294901760, %v227_v48  ;;  %v1748_v53 = vand.u32 4294901760, %v228_v49 }
  0x75   : > { %v4279_v38 = vand.u32 4294901760, %v308_v32  ;;  %v4281_v39 = vand.u32 4294901760, %v318_v33  ;;  %v3595_v40 = vpack.c.bf16 %v337_v35, %v330_v34  ;;  %v4305_v54 = vsub.f32 %v225_v46, %v1243_v50  ;;  %p3958_p1 = pnand %p3957_p12, %p3951_p3 }
  0x76   : > { %v3619_v41 = vpack.c.bf16 %v839_v37, %v832_v36  ;;  %v1338_v55 = vsub.f32 %v226_v47, %v1246_v51  ;;  %v1833_v56 = vsub.f32 %v227_v48, %v1745_v52  ;;  %v1840_v57 = vsub.f32 %v228_v49, %v1748_v53 }
  0x77   : > { %3331 = vmatprep.mubr.f32.mxu0 %v4279_v38  ;;  %3373 = vmatprep.mubr.f32.mxu1 %v4279_v38  ;;  %v1332_v58 = vand.u32 4294901760, %v4305_v54  ;;  %v4314_v62 = vpack.c.bf16 %v1246_v51, %v1243_v50  ;;  %v3663_v1 = vpack.c.bf16 %v1748_v53, %v1745_v52  ;;  %v2276_v19 = vand.u32 4294901760, %v2247_v17 }
  0x78   : > { %3332 = vmatmul.mubr.f32.vlgmr.msra.gmra.mrb[0].mxu0 %v4281_v39  ;;  %3596 = vmatprep.subr.bf16.mxu0 %v3595_v40  ;;  %v1339_v59 = vand.u32 4294901760, %v1338_v55  ;;  %v1834_v60 = vand.u32 4294901760, %v1833_v56  ;;  %v1841_v61 = vand.u32 4294901760, %v1840_v57  ;;  %v3647_v10 = vpack.c.bf16 %v1338_v55, %v4305_v54 }
  0x79   : > { %3374 = vmatmul.mubr.f32.vlgmr.msra.gmra.mrb[0].mxu1 %v4281_v39  ;;  %3598 = vmatpush3.bf16.msra.mxu0 %v3595_v40  ;;  %v1333_v63 = vsub.f32 %v4305_v54, %v1332_v58  ;;  %v3671_v11 = vpack.c.bf16 %v1840_v57, %v1833_v56 }
  0x7a   : > { %3620 = vmatprep.subr.bf16.mxu1 %v3619_v41  ;;  %3338 = vmatprep.mubr.f32.mxu0 %v4253_v13  ;;  %v1340_v0 = vsub.f32 %v1338_v55, %v1339_v59  ;;  %v1835_v2 = vsub.f32 %v1833_v56, %v1834_v60  ;;  %v1842_v3 = vsub.f32 %v1840_v57, %v1841_v61 }
  0x7b   : > { %3622 = vmatpush3.bf16.msra.mxu1 %v3619_v41  ;;  %3380 = vmatprep.mubr.f32.mxu1 %v4253_v13  ;;  %v1334_v4 = vand.u32 4294901760, %v1333_v63  ;;  %v3679_v15 = vpack.c.bf16 %v1841_v61, %v1834_v60 }
  0x7c   : > { %3600 = vmatprep.subr.bf16.mxu0 %v3599_v42  ;;  %3624 = vmatprep.subr.bf16.mxu1 %v3623_v43  ;;  %v1341_v5 = vand.u32 4294901760, %v1340_v0  ;;  %v1836_v6 = vand.u32 4294901760, %v1835_v2  ;;  %v1843_v7 = vand.u32 4294901760, %v1842_v3 }
  0x7e   : > { %v3643_v8 = vpack.c.bf16 %v1341_v5, %v1334_v4  ;;  %v3667_v9 = vpack.c.bf16 %v1843_v7, %v1836_v6 }
  0x80   : > { %3339 = vmatmul.mubr.f32.vlgmr.msra.gmra.mrb[0].mxu0 %v4255_v14 }
  0x81   : > { %3381 = vmatmul.mubr.f32.vlgmr.msra.gmra.mrb[0].mxu1 %v4255_v14  ;;  %3602 = vmatpush3.bf16.msra.mxu0 %v3599_v42 }
  0x82   : > { %3626 = vmatpush3.bf16.msra.mxu1 %v3623_v43  ;;  %3345 = vmatprep.mubr.f32.mxu0 %v4261_v20 }
  0x83   : > { %3387 = vmatprep.mubr.f32.mxu1 %v4261_v20  ;;  %3604 = vmatprep.subr.bf16.mxu0 %v4251_v12 }
  0x84   : > { %3628 = vmatprep.subr.bf16.mxu1 %v4257_v16 }
  0x88   : > { %3346 = vmatmul.mubr.f32.vlgmr.msra.gmra.mrb[0].mxu0 %v4264_v21 }
  0x89   : > { %3388 = vmatmul.mubr.f32.vlgmr.msra.gmra.mrb[0].mxu1 %v4264_v21  ;;  %3606 = vmatpush3.bf16.msra.mxu0 %v4251_v12 }
  0x8a   : > { %3630 = vmatpush3.bf16.msra.mxu1 %v4257_v16  ;;  %3352 = vmatprep.mubr.f32.mxu0 %v4270_v26 }
  0x8b   : > { %3394 = vmatprep.mubr.f32.mxu1 %v4270_v26  ;;  %3608 = vmatprep.subr.bf16.mxu0 %v3607_v44 }
  0x8c   : > { %3632 = vmatprep.subr.bf16.mxu1 %v3631_v45 }
  0x90   : > { %3353 = vmatmul.mubr.f32.vlgmr.msra.gmra.mrb[0].mxu0 %v4273_v27 }
  0x91   : > { %3395 = vmatmul.mubr.f32.vlgmr.msra.gmra.mrb[0].mxu1 %v4273_v27  ;;  %3610 = vmatpush3.bf16.msra.mxu0 %v3607_v44 }
  0x92   : > { %3634 = vmatpush3.bf16.msra.mxu1 %v3631_v45  ;;  %3359 = vmatprep.mubr.f32.mxu0 %v4253_v13 }
  0x93   : > { %3401 = vmatprep.mubr.f32.mxu1 %v4253_v13  ;;  %3612 = vmatprep.subr.bf16.mxu0 %v4251_v12 }
  0x94   : > { %3636 = vmatprep.subr.bf16.mxu1 %v4257_v16 }
  0x98   : > { %3360 = vmatmul.mubr.f32.vlgmr.msra.gmra.mrb[0].mxu0 %v4255_v14 }
  0x99   : > { %3402 = vmatmul.mubr.f32.vlgmr.msra.gmra.mrb[0].mxu1 %v4255_v14  ;;  %3614 = vmatpush3.bf16.msra.mxu0 %v4251_v12  ;;  %v3655_v12 = vpack.c.bf16 %v1339_v59, %v1332_v58 }
  0x9a   : > { %3638 = vmatpush3.bf16.msra.mxu1 %v4257_v16  ;;  %3366 = vmatprep.mubr.f32.mxu0 %v4253_v13  ;;  %v2246_v16 = vld [vmem:[#allocation7] sm:$0xff] }
  0x9b   : > { %3408 = vmatprep.mubr.f32.mxu1 %v4253_v13  ;;  %3640 = vmatprep.subr.bf16.mxu0 %v4314_v62  ;;  %v2273_v18 = vand.u32 4294901760, %v2246_v16 }
  0x9c   : > { %3664 = vmatprep.subr.bf16.mxu1 %v3663_v1 }
  0xa0   : > { %3367 = vmatmul.mubr.f32.vlgmr.msra.gmra.mrb[0].mxu0 %v4255_v14 }
  0xa1   : > { %3409 = vmatmul.mubr.f32.vlgmr.msra.gmra.mrb[0].mxu1 %v4255_v14  ;;  %3642 = vmatpush3.bf16.msra.mxu0 %v4314_v62 }
  0xa2   : > { %3666 = vmatpush3.bf16.msra.mxu1 %v3663_v1  ;;  %3415 = vmatprep.mubr.f32.mxu0 %v4279_v38 }
  0xa3   : > { %3457 = vmatprep.mubr.f32.mxu1 %v4279_v38  ;;  %3644 = vmatprep.subr.bf16.mxu0 %v3643_v8 }
  0xa4   : > { %3416 = vmatmul.mubr.f32.vlgmr.msra.gmra.mrb[2].mxu0 %v4281_v39  ;;  %3668 = vmatprep.subr.bf16.mxu1 %v3667_v9 }
  0xa5   : > { %3458 = vmatmul.mubr.f32.vlgmr.msra.gmra.mrb[2].mxu1 %v4281_v39  ;;  %3646 = vmatpush3.bf16.msra.mxu0 %v3643_v8 }
  0xa6   : > { %3670 = vmatpush3.bf16.msra.mxu1 %v3667_v9  ;;  %3422 = vmatprep.mubr.f32.mxu0 %v4253_v13 }
  0xa7   : > { %3464 = vmatprep.mubr.f32.mxu1 %v4253_v13  ;;  %3648 = vmatprep.subr.bf16.mxu0 %v3647_v10 }
  0xa8   : > { %3672 = vmatprep.subr.bf16.mxu1 %v3671_v11 }
  0xac   : > { %3423 = vmatmul.mubr.f32.vlgmr.msra.gmra.mrb[2].mxu0 %v4255_v14 }
  0xad   : > { %3465 = vmatmul.mubr.f32.vlgmr.msra.gmra.mrb[2].mxu1 %v4255_v14  ;;  %3650 = vmatpush3.bf16.msra.mxu0 %v3647_v10 }
  0xae   : > { %3674 = vmatpush3.bf16.msra.mxu1 %v3671_v11  ;;  %3429 = vmatprep.mubr.f32.mxu0 %v4261_v20 }
  0xaf   : > { %3471 = vmatprep.mubr.f32.mxu1 %v4261_v20  ;;  %3652 = vmatprep.subr.bf16.mxu0 %v4314_v62  ;;  %v4356_v20 = vpack.c.bf16 %v2276_v19, %v2273_v18 }
  0xb0   : > { %3676 = vmatprep.subr.bf16.mxu1 %v3663_v1 }
  0xb4   : > { %3430 = vmatmul.mubr.f32.vlgmr.msra.gmra.mrb[2].mxu0 %v4264_v21 }
  0xb5   : > { %3472 = vmatmul.mubr.f32.vlgmr.msra.gmra.mrb[2].mxu1 %v4264_v21  ;;  %3654 = vmatpush3.bf16.msra.mxu0 %v4314_v62  ;;  %v2421_v21 = vsub.f32 %v2246_v16, %v2273_v18 }
  0xb6   : > { %3678 = vmatpush3.bf16.msra.mxu1 %v3663_v1  ;;  %3436 = vmatprep.mubr.f32.mxu0 %v4270_v26 }
  0xb7   : > { %3478 = vmatprep.mubr.f32.mxu1 %v4270_v26  ;;  %3656 = vmatprep.subr.bf16.mxu0 %v3655_v12  ;;  %v2422_v22 = vand.u32 4294901760, %v2421_v21 }
  0xb8   : > { %3680 = vmatprep.subr.bf16.mxu1 %v3679_v15 }
  0xb9   : > { %v2423_v24 = vsub.f32 %v2421_v21, %v2422_v22 }
  0xbb   : > { %v2424_v26 = vand.u32 4294901760, %v2423_v24 }
  0xbc   : > { %3437 = vmatmul.mubr.f32.vlgmr.msra.gmra.mrb[2].mxu0 %v4273_v27 }
  0xbd   : > { %3479 = vmatmul.mubr.f32.vlgmr.msra.gmra.mrb[2].mxu1 %v4273_v27  ;;  %3658 = vmatpush3.bf16.msra.mxu0 %v3655_v12 }
  0xbe   : > { %3682 = vmatpush3.bf16.msra.mxu1 %v3679_v15  ;;  %3443 = vmatprep.mubr.f32.mxu0 %v4253_v13 }
  0xbf   : > { %3485 = vmatprep.mubr.f32.mxu1 %v4253_v13  ;;  %3660 = vmatprep.subr.bf16.mxu0 %v4314_v62 }
  0xc0   : > { %3684 = vmatprep.subr.bf16.mxu1 %v3663_v1 }
  0xc4   : > { %3444 = vmatmul.mubr.f32.vlgmr.msra.gmra.mrb[2].mxu0 %v4255_v14 }
  0xc5   : > { %3486 = vmatmul.mubr.f32.vlgmr.msra.gmra.mrb[2].mxu1 %v4255_v14  ;;  %3662 = vmatpush3.bf16.msra.mxu0 %v4314_v62 }
  0xc6   : > { %3686 = vmatpush3.bf16.msra.mxu1 %v3663_v1  ;;  %3450 = vmatprep.mubr.f32.mxu0 %v4253_v13 }
  0xc7   : > { %3492 = vmatprep.mubr.f32.mxu1 %v4253_v13  ;;  %3700 = vmatprep.subr.bf16.mxu0 %v4356_v20  ;;  %v2428_v13 = vsub.f32 %v2247_v17, %v2276_v19 }
  0xc8   : > { %3688 = vmatprep.subr.bf16.mxu1 %v4356_v20 }
  0xc9   : > { %v2429_v23 = vand.u32 4294901760, %v2428_v13  ;;  %v4362_v29 = vpack.c.bf16 %v2428_v13, %v2421_v21 }
  0xcb   : > { %v3703_v25 = vpack.c.bf16 %v2429_v23, %v2422_v22 }
  0xcc   : > { %3451 = vmatmul.mubr.f32.vlgmr.msra.gmra.mrb[2].mxu0 %v4255_v14 }
  0xcd   : > { %3493 = vmatmul.mubr.f32.vlgmr.msra.gmra.mrb[2].mxu1 %v4255_v14  ;;  %3702 = vmatpush3.bf16.msra.mxu0 %v4356_v20  ;;  %v2430_v14 = vsub.f32 %v2428_v13, %v2429_v23 }
  0xce   : > { %3690 = vmatpush3.bf16.msra.mxu1 %v4356_v20  ;;  %3704 = vmatprep.subr.bf16.mxu0 %v3703_v25 }
  0xcf   : > { %v2431_v27 = vand.u32 4294901760, %v2430_v14 }
  0xd1   : > { %v3691_v28 = vpack.c.bf16 %v2431_v27, %v2424_v26 }
  0xd3   : > { %3692 = vmatprep.subr.bf16.mxu1 %v3691_v28 }
 0x173   : > { %v3368_v30 = vpop.f32.mrb[0].mxu0 }
 0x174   : > { %v2252_v31 = vsel %vm231_vm0, %v3368_v30, 0  ;;  %v3410_v32 = vpop.f32.mrb[0].mxu1  ;;  %v730_v33 = vpop.f32.mrb[1].mxu0 }
 0x175   : > { %v4365_v34 = vand.u32 4294901760, %v2252_v31  ;;  %v2258_v35 = vsel %vm231_vm0, %v3410_v32, 0  ;;  %v2249_v36 = vsel %vm231_vm0, %v730_v33, 0  ;;  %v1232_v37 = vpop.f32.mrb[1].mxu1 }
 0x176   : > { %v4369_v38 = vand.u32 4294901760, %v2258_v35  ;;  %v4371_v39 = vand.u32 4294901760, %v2249_v36  ;;  %v2255_v40 = vsel %vm231_vm0, %v1232_v37, 0 }
 0x177   : > { %v4375_v41 = vsub.f32 %v2252_v31, %v4365_v34  ;;  %v4377_v42 = vand.u32 4294901760, %v2255_v40 }
 0x178   : > { %v4380_v43 = vsub.f32 %v2258_v35, %v4369_v38  ;;  %v4383_v44 = vsub.f32 %v2249_v36, %v4371_v39 }
 0x179   : > { %v2351_v45 = vand.u32 4294901760, %v4375_v41  ;;  %v4387_v46 = vsub.f32 %v2255_v40, %v4377_v42 }
 0x17a   : > { %v2341_v47 = vand.u32 4294901760, %v4383_v44  ;;  %v2371_v50 = vand.u32 4294901760, %v4380_v43 }
 0x17b   : > { %v2352_v48 = vsub.f32 %v4375_v41, %v2351_v45  ;;  %v2361_v49 = vand.u32 4294901760, %v4387_v46 }
 0x17c   : > { %3547 = vmatprep.mubr.f32.mxu0 %v2341_v47  ;;  %v2342_v51 = vsub.f32 %v4383_v44, %v2341_v47  ;;  %v2372_v55 = vsub.f32 %v4380_v43, %v2371_v50 }
 0x17d   : > { %3548 = vmatmul.mubr.f32.vlgmr.msra.gmra.mrb[4].mxu0 %v2351_v45  ;;  %v2362_v52 = vsub.f32 %v4387_v46, %v2361_v49  ;;  %v2353_v54 = vand.u32 4294901760, %v2352_v48 }
 0x17e   : > { %3550 = vmatprep.mubr.f32.mxu0 %v2361_v49  ;;  %v2343_v53 = vand.u32 4294901760, %v2342_v51  ;;  %3706 = vmatpush3.bf16.msra.mxu0 %v3703_v25  ;;  %v2373_v57 = vand.u32 4294901760, %v2372_v55 }
 0x17f   : > { %3708 = vmatprep.subr.bf16.mxu0 %v4356_v20  ;;  %v2363_v56 = vand.u32 4294901760, %v2362_v52 }
 0x180   : > { %3499 = vmatprep.mubr.f32.mxu1 %v2343_v53 }
 0x181   : > { %3500 = vmatmul.mubr.f32.vlgmr.msra.gmra.mrb[4].mxu1 %v2353_v54  ;;  %3551 = vmatmul.mubr.f32.gmra.mrb[6].mxu0 %v2371_v50 }
 0x182   : > { %3502 = vmatprep.mubr.f32.mxu1 %v2363_v56  ;;  %3694 = vmatpush3.bf16.msra.mxu1 %v3691_v28 }
 0x183   : > { %3696 = vmatprep.subr.bf16.mxu1 %v4362_v29 }
 0x185   : > { %3503 = vmatmul.mubr.f32.gmra.mrb[6].mxu1 %v2373_v57 }
 0x19f   : > { %v3452_v58 = vpop.f32.mrb[2].mxu0 }
 0x1a0   : > { %v2264_v59 = vsel %vm231_vm0, %v3452_v58, 0  ;;  %v3494_v60 = vpop.f32.mrb[2].mxu1  ;;  %v1734_v61 = vpop.f32.mrb[3].mxu0 }
 0x1a1   : > { %v2389_v62 = vand.u32 4294901760, %v2264_v59  ;;  %v2270_v63 = vsel %vm231_vm0, %v3494_v60, 0  ;;  %v2261_v0 = vsel %vm231_vm0, %v1734_v61, 0  ;;  %v2236_v1 = vpop.f32.mrb[3].mxu1 }
 0x1a2   : > { %v2409_v2 = vand.u32 4294901760, %v2270_v63  ;;  %v2379_v3 = vand.u32 4294901760, %v2261_v0  ;;  %v2267_v4 = vsel %vm231_vm0, %v2236_v1, 0 }
 0x1a3   : > { %v2390_v5 = vsub.f32 %v2264_v59, %v2389_v62  ;;  %v2399_v6 = vand.u32 4294901760, %v2267_v4 }
 0x1a4   : > { %v2410_v7 = vsub.f32 %v2270_v63, %v2409_v2  ;;  %v2380_v8 = vsub.f32 %v2261_v0, %v2379_v3 }
 0x1a5   : > { %v2400_v9 = vsub.f32 %v2267_v4, %v2399_v6  ;;  %v2391_v10 = vand.u32 4294901760, %v2390_v5 }
 0x1a6   : > { %v2381_v11 = vand.u32 4294901760, %v2380_v8  ;;  %v2411_v16 = vand.u32 4294901760, %v2410_v7 }
 0x1a7   : > { %v2401_v12 = vand.u32 4294901760, %v2400_v9  ;;  %v2392_v15 = vsub.f32 %v2390_v5, %v2391_v10 }
 0x1a8   : > { %3553 = vmatprep.mubr.f32.mxu0 %v2381_v11  ;;  %v2382_v17 = vsub.f32 %v2380_v8, %v2381_v11  ;;  %v2412_v13 = vsub.f32 %v2410_v7, %v2411_v16 }
 0x1a9   : > { %3554 = vmatmul.mubr.f32.gmra.mrb[8].mxu0 %v2391_v10  ;;  %v2402_v18 = vsub.f32 %v2400_v9, %v2401_v12  ;;  %v2393_v21 = vand.u32 4294901760, %v2392_v15 }
 0x1aa   : > { %3556 = vmatprep.mubr.f32.mxu0 %v2401_v12  ;;  %v2383_v19 = vand.u32 4294901760, %v2382_v17  ;;  %v2413_v23 = vand.u32 4294901760, %v2412_v13 }
 0x1ab   : > { %v2403_v22 = vand.u32 4294901760, %v2402_v18 }
 0x1ac   : > { %3505 = vmatprep.mubr.f32.mxu1 %v2383_v19 }
 0x1ad   : > { %3506 = vmatmul.mubr.f32.gmra.mrb[8].mxu1 %v2393_v21  ;;  %3557 = vmatmul.mubr.f32.gmra.mrb[10].mxu0 %v2411_v16 }
 0x1ae   : > { %3508 = vmatprep.mubr.f32.mxu1 %v2403_v22  ;;  %3563 = vmatprep.mubr.f32.mxu0 %v4371_v39 }
 0x1b1   : > { %3509 = vmatmul.mubr.f32.gmra.mrb[10].mxu1 %v2413_v23  ;;  %3564 = vmatmul.mubr.f32.vlgmr.msra.gmra.mrb[4].mxu0 %v4365_v34 }
 0x1b2   : > { %3515 = vmatprep.mubr.f32.mxu1 %v4371_v39  ;;  %3566 = vmatprep.mubr.f32.mxu0 %v4377_v42 }
 0x1b3   : > { %3710 = vmatpush3.bf16.msra.mxu0 %v4356_v20 }
 0x1b5   : > { %3516 = vmatmul.mubr.f32.vlgmr.msra.gmra.mrb[4].mxu1 %v4365_v34  ;;  %3567 = vmatmul.mubr.f32.gmra.mrb[6].mxu0 %v4369_v38 }
 0x1b6   : > { %3518 = vmatprep.mubr.f32.mxu1 %v4377_v42  ;;  %3698 = vmatpush3.bf16.msra.mxu1 %v4362_v29 }
 0x1b7   : > { %3569 = vmatprep.mubr.f32.mxu0 %v2379_v3 }
 0x1b9   : > { %3519 = vmatmul.mubr.f32.gmra.mrb[6].mxu1 %v4369_v38  ;;  %3570 = vmatmul.mubr.f32.gmra.mrb[8].mxu0 %v2389_v62 }
 0x1ba   : > { %3521 = vmatprep.mubr.f32.mxu1 %v2379_v3  ;;  %3572 = vmatprep.mubr.f32.mxu0 %v2399_v6 }
 0x1bd   : > { %3522 = vmatmul.mubr.f32.gmra.mrb[8].mxu1 %v2389_v62  ;;  %3573 = vmatmul.mubr.f32.gmra.mrb[10].mxu0 %v2409_v2 }
 0x1be   : > { %3524 = vmatprep.mubr.f32.mxu1 %v2399_v6  ;;  %3579 = vmatprep.mubr.f32.mxu0 %v4371_v39 }
 0x1c1   : > { %3525 = vmatmul.mubr.f32.gmra.mrb[10].mxu1 %v2409_v2  ;;  %3580 = vmatmul.mubr.f32.vlgmr.msra.gmra.mrb[4].mxu0 %v4365_v34 }
 0x1c2   : > { %3531 = vmatprep.mubr.f32.mxu1 %v4383_v44  ;;  %3582 = vmatprep.mubr.f32.mxu0 %v4377_v42 }
 0x1c5   : > { %3532 = vmatmul.mubr.f32.vlgmr.msra.gmra.mrb[4].mxu1 %v4375_v41  ;;  %3583 = vmatmul.mubr.f32.gmra.mrb[6].mxu0 %v4369_v38 }
 0x1c6   : > { %3534 = vmatprep.mubr.f32.mxu1 %v4387_v46  ;;  %3585 = vmatprep.mubr.f32.mxu0 %v2379_v3 }
 0x1c9   : > { %3535 = vmatmul.mubr.f32.gmra.mrb[6].mxu1 %v4380_v43  ;;  %3586 = vmatmul.mubr.f32.gmra.mrb[8].mxu0 %v2389_v62 }
 0x1ca   : > { %3537 = vmatprep.mubr.f32.mxu1 %v2380_v8  ;;  %3588 = vmatprep.mubr.f32.mxu0 %v2399_v6 }
 0x1cd   : > { %3538 = vmatmul.mubr.f32.gmra.mrb[8].mxu1 %v2390_v5  ;;  %3589 = vmatmul.mubr.f32.gmra.mrb[10].mxu0 %v2409_v2 }
 0x1ce   : > { %3540 = vmatprep.mubr.f32.mxu1 %v2400_v9 }
 0x1d1   : > { %3541 = vmatmul.mubr.f32.gmra.mrb[10].mxu1 %v2410_v7 }
 0x294   : > { %v3581_v20 = vpop.f32.mrb[4].mxu0 }
 0x295   : > { %v2986_v24 = vpop.f32.mrb[5].mxu0 }
 0x298   : > { %v3533_v14 = vpop.f32.mrb[4].mxu1  ;;  %v3584_v25 = vpop.f32.mrb[6].mxu0 }
 0x299   : > { %v3711_v26 = vadd.f32 %v3581_v20, %v3533_v14  ;;  %v2614_v27 = vpop.f32.mrb[5].mxu1  ;;  %v2998_v28 = vpop.f32.mrb[7].mxu0 }
 0x29a   : > { %v3712_v29 = vadd.f32 %v2986_v24, %v2614_v27 }
 0x29b   : > { %3033 = vst.msk [vmem:[%s218_s18 + $0x8] sm:$0xff] %vm231_vm0, %v3711_v26 }
 0x29c   : > { %3032 = vst.msk [vmem:[%s218_s18] sm:$0xff] %vm231_vm0, %v3712_v29  ;;  %v3536_v30 = vpop.f32.mrb[6].mxu1  ;;  %v3587_v31 = vpop.f32.mrb[8].mxu0 }
 0x29d   : > { %v3713_v32 = vadd.f32 %v3584_v25, %v3536_v30  ;;  %v2628_v33 = vpop.f32.mrb[7].mxu1  ;;  %v3010_v34 = vpop.f32.mrb[9].mxu0 }
 0x29e   : > { %v3714_v35 = vadd.f32 %v2998_v28, %v2628_v33 }
 0x29f   : > { %3035 = vst.msk [vmem:[%s218_s18 + $0x18] sm:$0xff] %vm231_vm0, %v3713_v32 }
 0x2a0   : > { %3034 = vst.msk [vmem:[%s218_s18 + $0x10] sm:$0xff] %vm231_vm0, %v3714_v35  ;;  %v3539_v36 = vpop.f32.mrb[8].mxu1  ;;  %v3590_v37 = vpop.f32.mrb[10].mxu0 }
 0x2a1   : > { %v3715_v38 = vadd.f32 %v3587_v31, %v3539_v36  ;;  %v2642_v39 = vpop.f32.mrb[9].mxu1  ;;  %v3022_v40 = vpop.f32.mrb[11].mxu0 }
 0x2a2   : > { %v3716_v41 = vadd.f32 %v3010_v34, %v2642_v39 }
 0x2a3   : > { %3037 = vst.msk [vmem:[%s218_s18 + $0x28] sm:$0xff] %vm231_vm0, %v3715_v38 }
 0x2a4   : > { %3036 = vst.msk [vmem:[%s218_s18 + $0x20] sm:$0xff] %vm231_vm0, %v3716_v41  ;;  %v3542_v42 = vpop.f32.mrb[10].mxu1 }
 0x2a5   : > { %v3717_v43 = vadd.f32 %v3590_v37, %v3542_v42  ;;  %v2656_v44 = vpop.f32.mrb[11].mxu1 }
 0x2a6   : > { %v3718_v45 = vadd.f32 %v3022_v40, %v2656_v44 }
 0x2a7   : > { %3039 = vst.msk [vmem:[%s218_s18 + $0x38] sm:$0xff] %vm231_vm0, %v3717_v43 }
 0x2a8   : > { %3038 = vst.msk [vmem:[%s218_s18 + $0x30] sm:$0xff] %vm231_vm0, %v3718_v45 }
 0x2a9   : > { %3961 = shalt.err (!%p3958_p1)
}
 0x2aa   : > { %s3962_s10 = scalar_lea.hbm %s4432_s27, 1024  ;;  %s3966_s26 = scalar_lea.hbm %s4483_s3, 2048 }
 0x2ab   : > { %p3963_p13 = scmp.ne.s32.totalorder %s4432_s27, %s3962_s10  ;;  %p3967_p4 = scmp.lt.u32.totalorder %s4432_s27, %s4483_s3 }
 0x2ac   : > { %p3968_p5 = scmp.lt.u32.totalorder %s3966_s26, %s3962_s10  ;;  %p3970_p11 = scmp.lt.u32.totalorder %s3962_s10, %s4432_s27 }
 0x2ad   : > { %p3964_p6 = pnand %p3963_p13, %p4497_p0 }
 0x2ae   : > { %p3969_p8 = por %p3968_p5, %p3967_p4 }
 0x2af   : > { %p3965_p10 = pneg %p3964_p6 }
 0x2b0   : > { %p3971_p2 = por %p3970_p11, %p3969_p8 }
 0x2b2   : > { %p3972_p3 = pnand %p3971_p2, %p3965_p10 }
 0x2b4   : > { %3975 = shalt.err (!%p3972_p3)
}
 0x2b5   : > { %s4026_s28 = smov 128   ;;  %s4027_s18 = smov 8  }
 0x2b6   : > { %3801 = dma.vmem_to_hbm [thread:$0]  (%p4497_p0), %s4434_s7, 1024, %s4432_s27, %s3041_s16, %s4026_s28, %s4026_s28, %s4027_s18  }
 0x2b7 PF: > { %s3070_s20 = sand.u32 1, %s4006_s12   ;;  %p4498_p7 = scmp.ne.s32.totalorder %s4488_s19, 0 }
 0x2b8   : > { %p4499_p9 = scmp.ge.s32.totalorder %s4018_s15, 2  ;;  %s3071_s8 = scalar_lea.sflag [#allocation4], %s3070_s20 }
 0x2ba   : > { %p3815_p12 = pnand %p4499_p9, %p4498_p7 }
 0x2bc   : > { %4001 = dma.done.wait (!%p3815_p12), %s3071_s8, 1024  }
 0x2bd   : > { %4003 = vsyncadd (!%p3815_p12), %s3071_s8, 4294966272  ;;  %p17_p1 = scmp.ge.s32.totalorder %s4164_s23, 4   ;;  %s4500_s12 = smov %s4010_s13 }
 0x2be   : > { %s4501_s13 = smov %s4014_s14  ;;  %s4502_s14 = smov %s4180_s9 }
 0x2bf   : > { %s4503_s15 = smov %s4164_s23  ;;  %19 = sbr.rel (!%p17_p1) target bundleno = 6 (0x6), region = 85 }
 0x2c6   :  { %3076 = vsyncpa [#allocation3], 1 }
 0x2c7   :  { %3078 = vsyncpa [#allocation3 + $0x1], 1 }
 0x2c8   :  { %3079 = vsyncpa [#allocation6], 1 }
 0x2c9   :  { %3080 = vsyncpa [#allocation4], 1 }
 0x2ca   :  { %3082 = vsyncpa [#allocation4 + $0x1], 1 }

</bundles_post_ra>
